<compile_context>
chip_gen: v5e
topology: v5e:2x2
jax: 0.10.0
libtpu: 0.0.40
codegen_flags: <defaults>
</compile_context>

<pallas_src>
import functools
import math

import jax
import jax.numpy as jnp
from jax.experimental import pallas as pl
from jax.experimental.pallas import tpu as pltpu


def _layernorm_kernel(x_ref, alpha_ref, bias_ref, o_ref, *, eps: float):
    # x_ref: (tile_rows, D), alpha_ref/bias_ref: (1, D), o_ref: (tile_rows, D)
    x = x_ref[...].astype(jnp.float32)          # no-op for f32 inputs
    d = x.shape[-1]

    mean = jnp.mean(x, axis=-1, keepdims=True)
    diff = x - mean
    # torch.std uses Bessel's correction (divide by N-1).  Two-pass formula
    # kept for numerical stability.  (D == 1 yields inf/nan, same as torch.)
    var = jnp.sum(diff * diff, axis=-1, keepdims=True) / jnp.float32(d - 1)
    # Exact per-row reciprocal (tile_rows, 1): one divide per row instead of
    # one per element.  approx reciprocal would violate the 1e-5 tolerance.
    inv = jnp.float32(1.0) / (jnp.sqrt(var) + jnp.float32(eps))

    alpha = alpha_ref[...].astype(jnp.float32)   # (1, D)
    bias = bias_ref[...].astype(jnp.float32)     # (1, D)

    # diff * inv: per-row (sublane) broadcast; * alpha / + bias: per-column
    # (lane) broadcast.  Keeps live tile-sized temporaries to a minimum.
    out = diff * inv * alpha + bias
    o_ref[...] = out.astype(o_ref.dtype)


def _choose_tile_rows(rows: int, d: int, itemsize: int,
                      vmem_budget_bytes: int) -> int:
    """Largest row tile whose double-buffered in+out fits the VMEM budget."""
    bytes_per_row = d * itemsize
    # 2 buffers for the x tile + 2 buffers for the out tile.
    max_rows = vmem_budget_bytes // max(1, 4 * bytes_per_row)
    max_rows = int(max(8, min(max_rows, 1024, rows)))
    # Prefer a sublane-aligned (multiple of 8) exact divisor of `rows` so
    # there are no partial edge blocks.
    start = max_rows - (max_rows % 8)
    for tile in range(start, 7, -8):
        if rows % tile == 0:
            return tile
    for tile in range(min(max_rows, rows), 0, -1):
        if rows % tile == 0:
            return tile
    return rows


def layer_normalization(x: jax.Array,
                        alpha: jax.Array,
                        bias: jax.Array,
                        eps: float = 1e-6,
                        tile_rows: int | None = None,
                        vmem_budget_bytes: int = 32 * 1024 * 1024) -> jax.Array:
    """x: (B, T, D); alpha, bias: (D,).  Returns (B, T, D)."""
    B, T, D = x.shape
    rows = B * T

    itemsize = jnp.dtype(x.dtype).itemsize
    if tile_rows is None:
        tile_rows = _choose_tile_rows(rows, D, itemsize, vmem_budget_bytes)
    assert rows % tile_rows == 0, "tile_rows must divide B*T"

    x2d = x.reshape(rows, D)
    alpha2d = alpha.reshape(1, D)
    bias2d = bias.reshape(1, D)

    # Raise the scoped VMEM limit so the bigger tiles compile; stay well under
    # v7x's 64 MiB physical VMEM per TensorCore.
    buf_bytes = 4 * tile_rows * D * itemsize            # x + out, double-buffered
    vmem_limit = max(16 * 1024 * 1024,
                     min(48 * 1024 * 1024, buf_bytes + 8 * 1024 * 1024))

    kernel = functools.partial(_layernorm_kernel, eps=eps)

    out2d = pl.pallas_call(
        kernel,
        out_shape=jax.ShapeDtypeStruct((rows, D), x.dtype),
        grid_spec=pltpu.PrefetchScalarGridSpec(
            num_scalar_prefetch=0,
            grid=(rows // tile_rows,),
            in_specs=[
                pl.BlockSpec((tile_rows, D), lambda i: (i, 0)),
                # Constant block index -> Pallas keeps alpha/bias resident in
                # VMEM and does not re-DMA them every grid step.
                pl.BlockSpec((1, D), lambda i: (0, 0)),
                pl.BlockSpec((1, D), lambda i: (0, 0)),
            ],
            out_specs=pl.BlockSpec((tile_rows, D), lambda i: (i, 0)),
        ),
        compiler_params=pltpu.CompilerParams(
            dimension_semantics=("parallel",),
            vmem_limit_bytes=int(vmem_limit)),
    )(x2d, alpha2d, bias2d)

    return out2d.reshape(B, T, D)


if __name__ == "__main__":
    # Module config: features = D.  D chosen as a multiple of 128 so output
    # stores are lane-dense (kernel is correct for any D).
    B, T, D = 2, 8, 128
    eps = 1e-6

    key = jax.random.PRNGKey(0)
    x = jax.random.normal(key, (B, T, D), dtype=jnp.float32)

    # Deterministic parameter init matching nn.Parameter(torch.ones/zeros(features))
    alpha = jnp.ones((D,), dtype=jnp.float32)
    bias = jnp.zeros((D,), dtype=jnp.float32)

    out = layer_normalization(x, alpha, bias, eps=eps)
    jax.block_until_ready(out)

    # Reference check in plain JAX (same unbiased-std, eps-on-std semantics as torch).
    mean = jnp.mean(x, axis=-1, keepdims=True)
    std = jnp.sqrt(jnp.sum((x - mean) ** 2, axis=-1, keepdims=True) / (D - 1))
    ref = alpha * (x - mean) / (std + eps) + bias
    assert jnp.allclose(out, ref, atol=1e-5, rtol=1e-5), "mismatch vs reference"

    print("KERNEL_OK")
</pallas_src>

<mosaic_0001>
module attributes {stable_mosaic.version = 11 : i64} {
  func.func @_layernorm_kernel(%arg0: i32, %arg1: memref<16x128xf32, #tpu.memory_space<vmem>>, %arg2: memref<1x128xf32, #tpu.memory_space<vmem>>, %arg3: memref<1x128xf32, #tpu.memory_space<vmem>>, %arg4: memref<16x128xf32, #tpu.memory_space<vmem>>) attributes {dimension_semantics = [#tpu.dimension_semantics<parallel>], iteration_bounds = array<i64: 1>, scalar_prefetch = 0 : i64, scratch_operands = 0 : i64, tpu.core_type = #tpu.core_type<tc>, window_params = [{transform_indices = @transform_0, window_bounds = array<i64: 16, 128>}, {pipeline_mode = #tpu.pipeline_mode<synchronous>, transform_indices = @transform_1, window_bounds = array<i64: 1, 128>}, {pipeline_mode = #tpu.pipeline_mode<synchronous>, transform_indices = @transform_2, window_bounds = array<i64: 1, 128>}, {transform_indices = @transform_3, window_bounds = array<i64: 16, 128>}]} {
    %c0 = arith.constant 0 : index
    %c0_0 = arith.constant 0 : index
    %0 = vector.load %arg1[%c0, %c0_0] : memref<16x128xf32, #tpu.memory_space<vmem>>, vector<16x128xf32>
    %cst = arith.constant dense<0.000000e+00> : vector<16xf32>
    %1 = vector.multi_reduction <add>, %0, %cst [1] : vector<16x128xf32> to vector<16xf32>
    %2 = vector.shape_cast %1 : vector<16xf32> to vector<16x1xf32>
    %cst_1 = arith.constant 1.280000e+02 : f32
    %3 = vector.broadcast %cst_1 : f32 to vector<16x1xf32>
    %4 = arith.divf %2, %3 : vector<16x1xf32>
    %5 = vector.broadcast %4 : vector<16x1xf32> to vector<16x128xf32>
    %6 = arith.subf %0, %5 : vector<16x128xf32>
    %7 = arith.mulf %6, %6 : vector<16x128xf32>
    %cst_2 = arith.constant dense<0.000000e+00> : vector<16xf32>
    %8 = vector.multi_reduction <add>, %7, %cst_2 [1] : vector<16x128xf32> to vector<16xf32>
    %9 = vector.shape_cast %8 : vector<16xf32> to vector<16x1xf32>
    %cst_3 = arith.constant 1.270000e+02 : f32
    %10 = vector.broadcast %cst_3 : f32 to vector<16x1xf32>
    %11 = arith.divf %9, %10 : vector<16x1xf32>
    %12 = math.sqrt %11 : vector<16x1xf32>
    %cst_4 = arith.constant 9.99999997E-7 : f32
    %13 = vector.broadcast %cst_4 : f32 to vector<16x1xf32>
    %14 = arith.addf %12, %13 : vector<16x1xf32>
    %cst_5 = arith.constant 1.000000e+00 : f32
    %15 = vector.broadcast %cst_5 : f32 to vector<16x1xf32>
    %16 = arith.divf %15, %14 : vector<16x1xf32>
    %c0_6 = arith.constant 0 : index
    %c0_7 = arith.constant 0 : index
    %17 = vector.load %arg2[%c0_6, %c0_7] : memref<1x128xf32, #tpu.memory_space<vmem>>, vector<1x128xf32>
    %c0_8 = arith.constant 0 : index
    %c0_9 = arith.constant 0 : index
    %18 = vector.load %arg3[%c0_8, %c0_9] : memref<1x128xf32, #tpu.memory_space<vmem>>, vector<1x128xf32>
    %19 = vector.broadcast %16 : vector<16x1xf32> to vector<16x128xf32>
    %20 = arith.mulf %6, %19 : vector<16x128xf32>
    %21 = vector.broadcast %17 : vector<1x128xf32> to vector<16x128xf32>
    %22 = arith.mulf %20, %21 : vector<16x128xf32>
    %23 = vector.broadcast %18 : vector<1x128xf32> to vector<16x128xf32>
    %24 = arith.addf %22, %23 : vector<16x128xf32>
    %c0_10 = arith.constant 0 : index
    %c0_11 = arith.constant 0 : index
    %25 = vector.load %arg4[%c0_10, %c0_11] : memref<16x128xf32, #tpu.memory_space<vmem>>, vector<16x128xf32>
    tpu.vector_store %arg4[%c0_10, %c0_11], %24 {strides = array<i32>} : memref<16x128xf32, #tpu.memory_space<vmem>>, vector<16x128xf32>,
    return
  }
  func.func @transform_0(%arg0: i32) -> (i32, i32) {
    %c0_i32 = arith.constant 0 : i32
    %c0_i32_0 = arith.constant 0 : i32
    return %arg0, %c0_i32 : i32, i32
  }
  func.func @transform_1(%arg0: i32) -> (i32, i32) {
    %c0_i32 = arith.constant 0 : i32
    %c0_i32_0 = arith.constant 0 : i32
    %c0_i32_1 = arith.constant 0 : i32
    return %c0_i32, %c0_i32_0 : i32, i32
  }
  func.func @transform_2(%arg0: i32) -> (i32, i32) {
    %c0_i32 = arith.constant 0 : i32
    %c0_i32_0 = arith.constant 0 : i32
    %c0_i32_1 = arith.constant 0 : i32
    return %c0_i32, %c0_i32_0 : i32, i32
  }
  func.func @transform_3(%arg0: i32) -> (i32, i32) {
    %c0_i32 = arith.constant 0 : i32
    %c0_i32_0 = arith.constant 0 : i32
    return %arg0, %c0_i32 : i32, i32
  }
}

</mosaic_0001>

<bundles_post_ra>
// kernel: tpu_custom_call.1
= control target key start
LH: loop header
LB: loop body
LE: loop exit
PB: predicated region body
PF: predicated region fallthrough
CT: control target
= control target key end

     0   :  { %8 = vsyncpa [#allocation3], 0  ;;  %s323_s0 = inlined_call_operand.hbm [shape: f32[16,128], index: 0, kind: input, shape index: {}]   ;;  %s324_s1 = inlined_call_operand.hbm [shape: f32[1,128], index: 1, kind: input, shape index: {}]   ;;  %s325_s2 = inlined_call_operand.vmem [shape: f32[1,128], index: 2, kind: input, shape index: {}]   ;;  %s326_s3 = inlined_call_operand.hbm [shape: f32[16,128], index: 3, kind: output, shape index: {}]  }
   0x1   :  { %9 = vsyncpa [#allocation6], 0 }
   0x2   :  { %10 = vsyncpa [#allocation4], 0  ;;  %s15_s14 = sshll.u32 %s323_s0, 4  ;;  %s268_s15 = smov [#allocation2]   ;;  %s16_s14 = int_to_ptr.hbm [resolvable:$true] %s15_s14 }
   0x3   :  { %s17_s16 = sshll.u32 %s268_s15, 4  ;;  %s29_s19 = sshll.u32 %s324_s1, 4  ;;  %s18_s16 = int_to_ptr.vmem [resolvable:$true] %s17_s16  ;;  %s30_s19 = int_to_ptr.hbm [resolvable:$true] %s29_s19 }
   0x4   :  { %s269_s20 = smov 128   ;;  %s270_s21 = smov 8  }
   0x5   :  { %23 = dma.hbm_to_vmem [thread:$0]  %s16_s14, 256, %s18_s16, [#allocation3], %s269_s20, %s269_s20, %s270_s21  }
   0x6   :  { %s271_s22 = smov [#allocation5]  }
   0x7   :  { %s31_s23 = sshll.u32 %s271_s22, 4  ;;  %s32_s23 = int_to_ptr.vmem [resolvable:$true] %s31_s23 }
   0x8   :  { %34 = dma.hbm_to_vmem [thread:$0]  %s30_s19, 16, %s32_s23, [#allocation6]  }
   0x9   :  { %262 = dma.done.wait [#allocation3], 256  }
   0xa   :  { %263 = vsyncadd [#allocation3], 4294967040 }
   0xb   :  { %264 = dma.done.wait [#allocation6], 16  }
   0xc   :  { %265 = vsyncadd [#allocation6], 4294967280  ;;  %v45_v0 = vld [vmem:[#allocation2] sm:$0xff]  ;;  %v46_v1 = vld [vmem:[#allocation2 + $0x8] sm:$0xff]  ;;  %v272_v2 = vmov 128.0   ;;  %v273_v17 = vmov 127.0  }
   0xd   :  { %47 = vadd.xlane.f32.xlu0 %v45_v0  ;;  %178 = vrcp.f32 %v272_v2  ;;  %v176_v61 = vld [vmem:[#allocation5] ss:$0 sm:$0xff]  ;;  %s274_s24 = smov [#allocation7]   ;;  %s155_s27 = sshll.u32 %s326_s3, 4  ;;  %s156_s27 = int_to_ptr.hbm [resolvable:$true] %s155_s27 }
   0xe   :  { %180 = vrcp.f32 %v273_v17  ;;  %s153_s25 = sshll.u32 %s274_s24, 4  ;;  %s154_s25 = int_to_ptr.vmem [resolvable:$true] %s153_s25 }
  0x13   :  { %v179_v3 = vpop.eup %178 }
  0x14   :  { %v52_v4 = vmul.f32 128.0, %v179_v3  ;;  %vm56_vm0 = vweird.f32 %v179_v3  ;;  %v181_v18 = vpop.eup %180 }
  0x15   :  { %49 = vadd.xlane.f32.xlu0 %v46_v1  ;;  %v69_v19 = vmul.f32 127.0, %v181_v18  ;;  %vm73_vm1 = vweird.f32 %v181_v18 }
  0x16   :  { %v53_v5 = vsub.f32 1.0, %v52_v4 }
  0x17   :  { %v70_v20 = vsub.f32 1.0, %v69_v19 }
  0x18   :  { %v54_v6 = vmul.f32 %v179_v3, %v53_v5 }
  0x19   :  { %v71_v21 = vmul.f32 %v181_v18, %v70_v20 }
  0x1a   :  { %v55_v7 = vadd.f32 %v179_v3, %v54_v6 }
  0x1b   :  { %v72_v22 = vadd.f32 %v181_v18, %v71_v21 }
  0x1c   :  { %v57_v8 = vsel %vm56_vm0, %v179_v3, %v55_v7 }
  0x1d   :  { %v74_v23 = vsel %vm73_vm1, %v181_v18, %v72_v22 }
  0x80   :  { %v48_v9 = vpop.xlane.xlu0 %47 }
  0x81   :  { %v58_v10 = vmul.f32 %v57_v8, %v48_v9 }
  0x83   :  { %v304_v11 = vsub.f32 %v45_v0, %v58_v10 }
  0x85   :  { %v62_v12 = vmul.f32 %v304_v11, %v304_v11 }
  0x87   :  { %64 = vadd.xlane.f32.xlu1 %v62_v12 }
  0x88   :  { %v50_v13 = vpop.xlane.xlu0 %49 }
  0x89   :  { %v59_v14 = vmul.f32 %v57_v8, %v50_v13 }
  0x8b   :  { %v308_v15 = vsub.f32 %v46_v1, %v59_v14  ;;  %v177_v1 = vld [vmem:[%s325_s2] ss:$0 sm:$0xff] }
  0x8d   :  { %v63_v16 = vmul.f32 %v308_v15, %v308_v15 }
  0x8f   :  { %66 = vadd.xlane.f32.xlu1 %v63_v16 }
  0xfa   :  { %v65_v24 = vpop.xlane.xlu1 %64 }
  0xfb   :  { %v75_v25 = vmul.f32 %v74_v23, %v65_v24 }
  0xfd   :  { %182 = vrsqrt.f32 %v75_v25  ;;  %vm84_vm2 = vcmp.eq.f32.partialorder %v75_v25, inf  ;;  %v87_v38 = vand.u32 2147483648, %v75_v25  ;;  %vm86_vm3 = vcmp.eq.f32.partialorder %v75_v25, 0.0 }
 0x102   :  { %v67_v26 = vpop.xlane.xlu1 %66 }
 0x103   :  { %v183_v27 = vpop.eup %182  ;;  %v76_v28 = vmul.f32 %v74_v23, %v67_v26 }
 0x104   :  { %v78_v29 = vmul.f32 %v183_v27, %v75_v25 }
 0x105   :  { %184 = vrsqrt.f32 %v76_v28  ;;  %vm96_vm4 = vcmp.eq.f32.partialorder %v76_v28, inf  ;;  %v99_v46 = vand.u32 2147483648, %v76_v28  ;;  %vm98_vm5 = vcmp.eq.f32.partialorder %v76_v28, 0.0 }
 0x106   :  { %v79_v30 = vmul.f32 %v183_v27, %v78_v29 }
 0x108   :  { %v80_v31 = vmul.f32 0.5, %v79_v30 }
 0x10a   :  { %v81_v32 = vsub.f32 1.5, %v80_v31 }
 0x10b   :  { %v185_v33 = vpop.eup %184 }
 0x10c   :  { %v82_v34 = vmul.f32 %v183_v27, %v81_v32  ;;  %v90_v35 = vmul.f32 %v185_v33, %v76_v28 }
 0x10e   :  { %v83_v36 = vmul.f32 %v82_v34, %v75_v25  ;;  %v91_v37 = vmul.f32 %v185_v33, %v90_v35 }
 0x110   :  { %v85_v39 = vsel %vm84_vm2, %v75_v25, %v83_v36  ;;  %v92_v40 = vmul.f32 0.5, %v91_v37 }
 0x111   :  { %v88_v41 = vsel %vm86_vm3, %v87_v38, %v85_v39 }
 0x112   :  { %v101_v42 = vadd.f32 1e-06, %v88_v41  ;;  %v93_v43 = vsub.f32 1.5, %v92_v40 }
 0x114   :  { %186 = vrcp.f32 %v101_v42  ;;  %v94_v44 = vmul.f32 %v185_v33, %v93_v43  ;;  %v114_v53 = vand.u32 2147483648, %v101_v42  ;;  %v112_v55 = vand.u32 2147483647, %v101_v42 }
 0x115   :  { %vm108_vm7 = vweird.f32 %v101_v42 }
 0x116   :  { %v95_v45 = vmul.f32 %v94_v44, %v76_v28  ;;  %v115_v58 = vor.u32 1.1754944e-38, %v114_v53  ;;  %vm113_vm9 = vcmp.eq.f32.partialorder %v112_v55, 8.507059e+37 }
 0x118   :  { %v97_v47 = vsel %vm96_vm4, %v76_v28, %v95_v45 }
 0x119   :  { %v100_v48 = vsel %vm98_vm5, %v99_v46, %v97_v47 }
 0x11a   :  { %v187_v49 = vpop.eup %186  ;;  %v102_v50 = vadd.f32 1e-06, %v100_v48 }
 0x11b   :  { %v104_v51 = vmul.f32 %v187_v49, %v101_v42  ;;  %vm109_vm6 = vweird.f32 %v187_v49 }
 0x11c   :  { %188 = vrcp.f32 %v102_v50  ;;  %vm110_vm8 = vmor %vm108_vm7, %vm109_vm6  ;;  %v129_v2 = vand.u32 2147483648, %v102_v50  ;;  %v127_v4 = vand.u32 2147483647, %v102_v50  ;;  %vm123_vm11 = vweird.f32 %v102_v50 }
 0x11d   :  { %v105_v52 = vsub.f32 1.0, %v104_v51 }
 0x11e   :  { %v130_v8 = vor.u32 1.1754944e-38, %v129_v2  ;;  %vm128_vm13 = vcmp.eq.f32.partialorder %v127_v4, 8.507059e+37 }
 0x11f   :  { %v106_v54 = vmul.f32 %v187_v49, %v105_v52 }
 0x121   :  { %v107_v56 = vadd.f32 %v187_v49, %v106_v54 }
 0x122   :  { %v189_v57 = vpop.eup %188 }
 0x123   :  { %v111_v59 = vsel %vm110_vm8, %v187_v49, %v107_v56  ;;  %v119_v60 = vmul.f32 %v189_v57, %v102_v50  ;;  %vm124_vm10 = vweird.f32 %v189_v57 }
 0x124   :  { %v116_v62 = vsel %vm113_vm9, %v115_v58, %v111_v59  ;;  %vm125_vm12 = vmor %vm123_vm11, %vm124_vm10 }
 0x125   :  { %v120_v63 = vsub.f32 1.0, %v119_v60  ;;  %v135_v0 = vmul.f32 %v116_v62, %v304_v11 }
 0x127   :  { %v121_v3 = vmul.f32 %v189_v57, %v120_v63  ;;  %v140_v5 = vmul.f32 %v176_v61, %v135_v0 }
 0x129   :  { %v122_v6 = vadd.f32 %v189_v57, %v121_v3  ;;  %v145_v7 = vadd.f32 %v177_v1, %v140_v5 }
 0x12b   :  { %v126_v9 = vsel %vm125_vm12, %v189_v57, %v122_v6  ;;  %147 = vst [vmem:[#allocation7] sm:$0xff] %v145_v7 }
 0x12c   :  { %v131_v10 = vsel %vm128_vm13, %v130_v8, %v126_v9 }
 0x12d   :  { %v136_v11 = vmul.f32 %v131_v10, %v308_v15 }
 0x12f   :  { %v141_v12 = vmul.f32 %v176_v61, %v136_v11 }
 0x131   :  { %v146_v13 = vadd.f32 %v177_v1, %v141_v12 }
 0x133   :  { %148 = vst [vmem:[#allocation7 + $0x8] sm:$0xff] %v146_v13 }
 0x134   :  { %161 = dma.vmem_to_hbm [thread:$0]  %s154_s25, 256, %s156_s27, [#allocation4], %s269_s20, %s269_s20, %s270_s21  }
 0x135   :  { %266 = dma.done.wait [#allocation4], 256  }
 0x136   :  { %267 = vsyncadd [#allocation4], 4294967040 }
 0x137   :  { %166 = vsyncpa [#allocation3], 1 }
 0x138   :  { %167 = vsyncpa [#allocation6], 1 }
 0x139   :  { %168 = vsyncpa [#allocation4], 1 }

</bundles_post_ra>
